<compile_context>
chip_gen: v6e
topology: v6e:2x2x1
jax: 0.10.0
libtpu: 0.0.40
codegen_flags: <defaults>
</compile_context>

<pallas_src>
import functools

import jax
import jax.numpy as jnp
from jax.experimental import pallas as pl
from jax.experimental.pallas import tpu as pltpu


def _round_up(v: int, m: int) -> int:
    return ((v + m - 1) // m) * m


def _cdiv(a: int, b: int) -> int:
    return (a + b - 1) // b


def _tpu_vmem_capacity_bytes() -> int:
    try:
        return int(pltpu.get_tpu_info().vmem_capacity_bytes)
    except Exception:
        return 64 << 20  # conservative: assume smallest current part (v7x)


def _select_config(B, H, C, x_dtype, w_dtype, tile_b, tile_n, tile_k):
    """Per-generation tile sizes + VMEM limit derived from the real footprint."""
    vmem_cap = _tpu_vmem_capacity_bytes()
    small_vmem = vmem_cap <= (96 << 20)  # v7x-class: 64 MiB VMEM per TensorCore

    # Per-generation defaults (review: v5e/v6e up to 1024^2 output tiles,
    # v7x 512^2 under its 64 MiB budget); tile_k large to shrink the K grid.
    if tile_b is None:
        tile_b = 512 if small_vmem else 1024
    if tile_n is None:
        tile_n = 512 if small_vmem else 1024
    if tile_k is None:
        tile_k = 1024

    # Clamp to the padded problem, keep (8,128) / lane alignment.
    tile_b = _round_up(min(tile_b, _round_up(B, 8)), 8)
    tile_n = _round_up(min(tile_n, _round_up(C, 128)), 128)
    tile_k = _round_up(min(tile_k, _round_up(H, 128)), 128)

    # Megacore guard (v7x has 2 TensorCores sharded over the "parallel" axes):
    # avoid a 1x1 parallel grid when the batch is big enough to split.
    if small_vmem:
        bp8 = _round_up(B, 8)
        n_parallel = _cdiv(bp8, tile_b) * _cdiv(_round_up(C, 128), tile_n)
        if n_parallel < 2 and bp8 > 8:
            tile_b = max(8, _round_up(_cdiv(bp8, 2), 8))

    x_isz = jnp.dtype(x_dtype).itemsize
    w_isz = jnp.dtype(w_dtype).itemsize

    def footprint(tb, tn, tk):
        # Double-buffered inputs + double-buffered f32 output tile (which is
        # also the accumulator); no separate acc scratch.
        return (2 * (tb * tk * x_isz + tk * tn * w_isz + tn * 4)
                + 2 * (tb * tn * 4))

    cap = (44 << 20) if small_vmem else (100 << 20)
    # Shrink tiles (K first, then N, then B) until the footprint fits the cap.
    while footprint(tile_b, tile_n, tile_k) * 1.4 > cap and tile_k > 128:
        tile_k = _round_up(tile_k // 2, 128)
    while footprint(tile_b, tile_n, tile_k) * 1.4 > cap and tile_n > 128:
        tile_n = _round_up(tile_n // 2, 128)
    while footprint(tile_b, tile_n, tile_k) * 1.4 > cap and tile_b > 8:
        tile_b = _round_up(tile_b // 2, 8)

    vmem_limit = int(min(cap, max(1.4 * footprint(tile_b, tile_n, tile_k), 8 << 20)))
    return tile_b, tile_n, tile_k, vmem_limit


def _fwd_kernel(inv_t_ref, x_ref, w_ref, b_ref, o_ref, *, compute_dtype):
    # inv_t_ref: (1,) SMEM scalar = 1 / temperature (hoisted from per-tile div)
    # x_ref: (TB, TK) VMEM   w_ref: (TK, TN) VMEM   b_ref: (1, TN) f32 VMEM
    # o_ref: (TB, TN) f32 VMEM -- resident across the K axis, used as accumulator.
    k = pl.program_id(2)

    @pl.when(k == 0)
    def _():
        o_ref[...] = jnp.zeros_like(o_ref)

    # Cast to the MXU compute dtype after the DMA (no separate HBM cast pass);
    # accumulate in f32 directly into the resident output tile.
    o_ref[...] += jnp.dot(
        x_ref[...].astype(compute_dtype),
        w_ref[...].astype(compute_dtype),
        preferred_element_type=jnp.float32,
    )

    @pl.when(k == pl.num_programs(2) - 1)
    def _():
        # bias + temperature scaling applied once per output tile (finalize only)
        o_ref[...] = (o_ref[...] + b_ref[...]) * inv_t_ref[0]


@functools.partial(
    jax.jit,
    static_argnames=("tile_b", "tile_n", "tile_k", "compute_dtype", "vmem_limit"),
)
def _forward_impl(x, w, b, temperature, *, tile_b, tile_n, tile_k,
                  compute_dtype, vmem_limit):
    B, H = x.shape
    C = w.shape[1]

    Bp = _round_up(B, tile_b)
    Hp = _round_up(H, tile_k)
    Cp = _round_up(C, tile_n)

    # Zero-pad to tile multiples (extra K rows/cols contribute 0; extra B/C
    # rows/cols are sliced off).  No dtype cast here -- done in-kernel.
    xp = x if (Bp, Hp) == (B, H) else jnp.pad(x, ((0, Bp - B), (0, Hp - H)))
    wp = w if (Hp, Cp) == (H, C) else jnp.pad(w, ((0, Hp - H), (0, Cp - C)))
    bp = (b if Cp == C else jnp.pad(b, (0, Cp - C)))
    bp = bp.reshape(1, Cp).astype(jnp.float32)

    # Hoisted reciprocal: one scalar op, consumed as an SMEM scalar per tile.
    inv_t = (1.0 / temperature.astype(jnp.float32)).reshape((1,))

    grid = (Bp // tile_b, Cp // tile_n, Hp // tile_k)

    flops = 2 * Bp * Hp * Cp
    bytes_accessed = (
        Bp * Hp * jnp.dtype(xp.dtype).itemsize * (Cp // tile_n)   # x re-reads
        + Hp * Cp * jnp.dtype(wp.dtype).itemsize * (Bp // tile_b)  # w re-reads
        + Bp * Cp * 4                                              # output write
        + Cp * 4                                                   # bias
    )

    kernel = functools.partial(_fwd_kernel, compute_dtype=compute_dtype)

    out_p = pl.pallas_call(
        kernel,
        out_shape=jax.ShapeDtypeStruct((Bp, Cp), jnp.float32),
        grid_spec=pltpu.PrefetchScalarGridSpec(
            num_scalar_prefetch=0,
            grid=grid,
            in_specs=[
                pl.BlockSpec((1,), lambda i, j, k: (0,),
                             memory_space=pltpu.MemorySpace.SMEM),     # 1/T scalar
                pl.BlockSpec((tile_b, tile_k), lambda i, j, k: (i, k)),  # x tile
                pl.BlockSpec((tile_k, tile_n), lambda i, j, k: (k, j)),  # w tile
                pl.BlockSpec((1, tile_n), lambda i, j, k: (0, j)),       # bias tile
            ],
            out_specs=pl.BlockSpec((tile_b, tile_n), lambda i, j, k: (i, j)),
        ),
        compiler_params=pltpu.CompilerParams(
            dimension_semantics=("parallel", "parallel", "arbitrary"),
            vmem_limit_bytes=vmem_limit,
        ),
        cost_estimate=pl.CostEstimate(
            flops=flops, transcendentals=0, bytes_accessed=int(bytes_accessed)),
    )(inv_t, xp, wp, bp)

    return out_p[:B, :C]


def model_with_temperature_forward(
    x, w, b, temperature, *,
    tile_b=None, tile_n=None, tile_k=None, compute_dtype=jnp.bfloat16,
):
    """x: [B, H], w: [H, C], b: [C], temperature: [1] -> [B, C] f32.

    Fused linear classifier + temperature scaling (logits / T).  Tile sizes are
    auto-selected per TPU generation unless overridden.  Pass
    compute_dtype=jnp.float32 for strict f32 logit parity.
    """
    B, H = x.shape
    C = w.shape[1]
    tb, tn, tk, vmem_limit = _select_config(
        B, H, C, x.dtype, w.dtype, tile_b, tile_n, tile_k)
    return _forward_impl(
        x, w, b, temperature,
        tile_b=tb, tile_n=tn, tile_k=tk,
        compute_dtype=compute_dtype, vmem_limit=vmem_limit,
    )


if __name__ == "__main__":
    # Small shapes consistent with a classification model wrapped by
    # ModelWithTemperature.
    B, H, C = 8, 32, 16

    key = jax.random.PRNGKey(0)
    kx, kw, kb = jax.random.split(key, 3)
    x = jax.random.normal(kx, (B, H), dtype=jnp.float32)
    w = jax.random.normal(kw, (H, C), dtype=jnp.float32) * 0.1   # synthetic model weights
    b = jax.random.normal(kb, (C,), dtype=jnp.float32) * 0.1     # synthetic model bias
    # nn.Parameter(torch.ones(1) * 1.0) in __init__; perturb slightly so the
    # division is non-trivial.
    temperature = jnp.array([1.5], dtype=jnp.float32)

    out = model_with_temperature_forward(x, w, b, temperature)
    out = jax.block_until_ready(out)

    # Pure-JAX reference for the same forward pass (same bf16 rounding of the
    # matmul inputs, f32 accumulation).
    xb = x.astype(jnp.bfloat16).astype(jnp.float32)
    wb = w.astype(jnp.bfloat16).astype(jnp.float32)
    ref = (xb @ wb + b[None, :]) / temperature[0]

    assert out.shape == (B, C)
    assert out.dtype == jnp.float32
    assert jnp.allclose(out, ref, atol=2e-3, rtol=2e-3), "mismatch vs reference"

    # TODO(synk): set_temperature / _ECELoss (LBFGS fitting + ECE metric) are
    # training/eval-time host-side routines, not part of forward; not kernelized.

    print("KERNEL_OK")
</pallas_src>

<mosaic_0001>
module attributes {stable_mosaic.version = 11 : i64} {
  func.func @_fwd_kernel(%arg0: i32, %arg1: i32, %arg2: i32, %arg3: memref<1xf32, #tpu.memory_space<smem>>, %arg4: memref<8x128xf32, #tpu.memory_space<vmem>>, %arg5: memref<128x128xf32, #tpu.memory_space<vmem>>, %arg6: memref<1x128xf32, #tpu.memory_space<vmem>>, %arg7: memref<8x128xf32, #tpu.memory_space<vmem>>) attributes {dimension_semantics = [#tpu.dimension_semantics<parallel>, #tpu.dimension_semantics<parallel>, #tpu.dimension_semantics<arbitrary>], iteration_bounds = array<i64: 1, 1, 1>, scalar_prefetch = 0 : i64, scratch_operands = 0 : i64, tpu.core_type = #tpu.core_type<tc>, window_params = [{transform_indices = @transform_0, window_bounds = array<i64: 1>}, {transform_indices = @transform_1, window_bounds = array<i64: 8, 128>}, {transform_indices = @transform_2, window_bounds = array<i64: 128, 128>}, {transform_indices = @transform_3, window_bounds = array<i64: 1, 128>}, {transform_indices = @transform_4, window_bounds = array<i64: 8, 128>}]} {
    %c0_i32 = arith.constant 0 : i32
    %0 = arith.cmpi eq, %arg2, %c0_i32 : i32
    %1 = arith.extui %0 : i1 to i32
    %c0_i32_0 = arith.constant 0 : i32
    %2 = arith.cmpi ne, %1, %c0_i32_0 : i32
    scf.if %2 {
      %cst_10 = arith.constant 0.000000e+00 : f32
      %14 = vector.broadcast %cst_10 : f32 to vector<8x128xf32>
      %c0_11 = arith.constant 0 : index
      %c0_12 = arith.constant 0 : index
      %15 = vector.load %arg7[%c0_11, %c0_12] : memref<8x128xf32, #tpu.memory_space<vmem>>, vector<8x128xf32>
      tpu.vector_store %arg7[%c0_11, %c0_12], %14 {strides = array<i32>} : memref<8x128xf32, #tpu.memory_space<vmem>>, vector<8x128xf32>,
    } else {
    }
    %c0 = arith.constant 0 : index
    %c0_1 = arith.constant 0 : index
    %3 = vector.load %arg7[%c0, %c0_1] : memref<8x128xf32, #tpu.memory_space<vmem>>, vector<8x128xf32>
    %c0_2 = arith.constant 0 : index
    %c0_3 = arith.constant 0 : index
    %4 = vector.load %arg4[%c0_2, %c0_3] : memref<8x128xf32, #tpu.memory_space<vmem>>, vector<8x128xf32>
    %5 = arith.truncf %4 : vector<8x128xf32> to vector<8x128xbf16>
    %c0_4 = arith.constant 0 : index
    %c0_5 = arith.constant 0 : index
    %6 = vector.load %arg5[%c0_4, %c0_5] : memref<128x128xf32, #tpu.memory_space<vmem>>, vector<128x128xf32>
    %7 = arith.truncf %6 : vector<128x128xf32> to vector<128x128xbf16>
    %cst = arith.constant dense<0.000000e+00> : vector<8x128xf32>
    %8 = tpu.matmul %5, %7, %cst {dimension_numbers = #tpu.dot_dimension_numbers<[1], [0], [0], [1], [0, 0, 1, 1], [], []>} : vector<8x128xbf16>, vector<128x128xbf16>, vector<8x128xf32> -> vector<8x128xf32>
    %9 = arith.addf %3, %8 : vector<8x128xf32>
    %c0_6 = arith.constant 0 : index
    %c0_7 = arith.constant 0 : index
    %10 = vector.load %arg7[%c0_6, %c0_7] : memref<8x128xf32, #tpu.memory_space<vmem>>, vector<8x128xf32>
    tpu.vector_store %arg7[%c0_6, %c0_7], %9 {strides = array<i32>} : memref<8x128xf32, #tpu.memory_space<vmem>>, vector<8x128xf32>,
    %c0_i32_8 = arith.constant 0 : i32
    %11 = arith.cmpi eq, %arg2, %c0_i32_8 : i32
    %12 = arith.extui %11 : i1 to i32
    %c0_i32_9 = arith.constant 0 : i32
    %13 = arith.cmpi ne, %12, %c0_i32_9 : i32
    scf.if %13 {
      %c0_10 = arith.constant 0 : index
      %c0_11 = arith.constant 0 : index
      %14 = vector.load %arg7[%c0_10, %c0_11] : memref<8x128xf32, #tpu.memory_space<vmem>>, vector<8x128xf32>
      %c0_12 = arith.constant 0 : index
      %c0_13 = arith.constant 0 : index
      %15 = vector.load %arg6[%c0_12, %c0_13] : memref<1x128xf32, #tpu.memory_space<vmem>>, vector<1x128xf32>
      %16 = vector.broadcast %15 : vector<1x128xf32> to vector<8x128xf32>
      %17 = arith.addf %14, %16 : vector<8x128xf32>
      %c0_14 = arith.constant 0 : index
      %18 = memref.load %arg3[%c0_14] : memref<1xf32, #tpu.memory_space<smem>>
      %19 = vector.broadcast %18 : f32 to vector<8x128xf32>
      %20 = arith.mulf %17, %19 : vector<8x128xf32>
      %c0_15 = arith.constant 0 : index
      %c0_16 = arith.constant 0 : index
      %21 = vector.load %arg7[%c0_15, %c0_16] : memref<8x128xf32, #tpu.memory_space<vmem>>, vector<8x128xf32>
      tpu.vector_store %arg7[%c0_15, %c0_16], %20 {strides = array<i32>} : memref<8x128xf32, #tpu.memory_space<vmem>>, vector<8x128xf32>,
    } else {
    }
    return
  }
  func.func @transform_0(%arg0: i32, %arg1: i32, %arg2: i32) -> i32 {
    %c0_i32 = arith.constant 0 : i32
    %c0_i32_0 = arith.constant 0 : i32
    return %c0_i32 : i32
  }
  func.func @transform_1(%arg0: i32, %arg1: i32, %arg2: i32) -> (i32, i32) {
    %c0_i32 = arith.constant 0 : i32
    return %arg0, %arg2 : i32, i32
  }
  func.func @transform_2(%arg0: i32, %arg1: i32, %arg2: i32) -> (i32, i32) {
    %c0_i32 = arith.constant 0 : i32
    return %arg2, %arg1 : i32, i32
  }
  func.func @transform_3(%arg0: i32, %arg1: i32, %arg2: i32) -> (i32, i32) {
    %c0_i32 = arith.constant 0 : i32
    %c0_i32_0 = arith.constant 0 : i32
    return %c0_i32, %arg1 : i32, i32
  }
  func.func @transform_4(%arg0: i32, %arg1: i32, %arg2: i32) -> (i32, i32) {
    %c0_i32 = arith.constant 0 : i32
    return %arg0, %arg1 : i32, i32
  }
}

</mosaic_0001>

<bundles_post_ra>
// kernel: _forward_impl.1
= control target key start
LH: loop header
LB: loop body
LE: loop exit
PB: predicated region body
PF: predicated region fallthrough
CT: control target
= control target key end

     0   :  { %v179_v3 = vmov 0.0   ;;  %vm180_vm0 = vmmov 0   ;;  %s267_s0 = inlined_call_operand.<no memory space> [shape: f32[1], index: 0, kind: input, shape index: {}]   ;;  %s268_s1 = inlined_call_operand.vmem [shape: f32[8,128], index: 1, kind: input, shape index: {}]   ;;  %s269_s2 = inlined_call_operand.vmem [shape: f32[128,128], index: 2, kind: input, shape index: {}]   ;;  %s270_s3 = inlined_call_operand.vmem [shape: f32[1,128], index: 3, kind: input, shape index: {}]   ;;  %s271_s4 = inlined_call_operand.hbm [shape: f32[8,128], index: 4, kind: output, shape index: {}]  }
   0x1   :  { %v42_v0 = vld [vmem:[%s269_s2 + $0x70] sm:$0xff]  ;;  %v43_v1 = vld [vmem:[%s269_s2 + $0x78] sm:$0xff]  ;;  %v40_v2 = vld [vmem:[%s269_s2 + $0x60] sm:$0xff]  ;;  %134 = vmatprep.subr.bf16.mxu0 %v179_v3  ;;  %150 = vmatprep.mubr.msk.bf16.mxu0 %vm180_vm0, %v179_v3 }
   0x2   :  { %v51_v4 = vpack.c.bf16 %v43_v1, %v42_v0  ;;  %v41_v5 = vld [vmem:[%s269_s2 + $0x68] sm:$0xff]  ;;  %v38_v7 = vld [vmem:[%s269_s2 + $0x50] sm:$0xff]  ;;  %v39_v8 = vld [vmem:[%s269_s2 + $0x58] sm:$0xff] }
   0x3   :  { %v50_v6 = vpack.c.bf16 %v41_v5, %v40_v2 }
   0x4   :  { %135 = vmatpush3.bf16.msra.mxu0 %v51_v4 }
   0x5   :  { %136 = vmatprep.subr.bf16.mxu0 %v179_v3 }
   0x6   :  { %10 = vsyncpa [#allocation4], 0  ;;  %v49_v9 = vpack.c.bf16 %v39_v8, %v38_v7  ;;  %v36_v10 = vld [vmem:[%s269_s2 + $0x40] sm:$0xff]  ;;  %v37_v11 = vld [vmem:[%s269_s2 + $0x48] sm:$0xff]  ;;  %v107_v30 = vstv %s267_s0 }
   0x7   :  { %v48_v12 = vpack.c.bf16 %v37_v11, %v36_v10  ;;  %v34_v13 = vld [vmem:[%s269_s2 + $0x30] sm:$0xff]  ;;  %v35_v14 = vld [vmem:[%s269_s2 + $0x38] sm:$0xff]  ;;  %v32_v16 = vld [vmem:[%s269_s2 + $0x20] sm:$0xff] }
   0x8   :  { %137 = vmatpush3.bf16.msra.mxu0 %v50_v6  ;;  %v47_v15 = vpack.c.bf16 %v35_v14, %v34_v13  ;;  %v33_v17 = vld [vmem:[%s269_s2 + $0x28] sm:$0xff]  ;;  %v30_v19 = vld [vmem:[%s269_s2 + $0x10] sm:$0xff]  ;;  %v31_v20 = vld [vmem:[%s269_s2 + $0x18] sm:$0xff] }
   0x9   :  { %138 = vmatprep.subr.bf16.mxu0 %v179_v3  ;;  %v46_v18 = vpack.c.bf16 %v33_v17, %v32_v16  ;;  %v45_v21 = vpack.c.bf16 %v31_v20, %v30_v19  ;;  %v28_v22 = vld [vmem:[%s269_s2] sm:$0xff]  ;;  %v29_v23 = vld [vmem:[%s269_s2 + $0x8] sm:$0xff]  ;;  %s181_s2 = smov [#allocation3]  }
   0xa   :  { %v44_v24 = vpack.c.bf16 %v29_v23, %v28_v22  ;;  %v26_v25 = vld [vmem:[%s268_s1] sm:$0xff]  ;;  %s116_s27 = sshll.u32 %s181_s2, 4  ;;  %s117_s27 = int_to_ptr.vmem [resolvable:$true] %s116_s27 }
   0xb   :  { %v27_v26 = vpack.c.bf16 %v26_v25, %v26_v25  ;;  %v124_v28 = vld [vmem:[%s270_s3] ss:$0 sm:$0xff]  ;;  %s157_s1 = scalar_lea.vmem %s117_s27, 128  ;;  %p162_p1 = scmp.lt.s32.totalorder %s117_s27, %s117_s27 }
   0xc   :  { %139 = vmatpush3.bf16.msra.mxu0 %v49_v9  ;;  %p158_p0 = scmp.ne.s32.totalorder %s117_s27, %s157_s1  ;;  %p163_p2 = scmp.lt.s32.totalorder %s157_s1, %s157_s1 }
   0xd   :  { %140 = vmatprep.subr.bf16.mxu0 %v179_v3 }
   0xe   :  { %p164_p3 = por %p163_p2, %p162_p1 }
  0x10   :  { %141 = vmatpush3.bf16.msra.mxu0 %v48_v12  ;;  %p165_p4 = pnand %p164_p3, %p158_p0 }
  0x11   :  { %142 = vmatprep.subr.bf16.mxu0 %v179_v3 }
  0x14   :  { %143 = vmatpush3.bf16.msra.mxu0 %v47_v15 }
  0x15   :  { %144 = vmatprep.subr.bf16.mxu0 %v179_v3 }
  0x18   :  { %145 = vmatpush3.bf16.msra.mxu0 %v46_v18 }
  0x19   :  { %146 = vmatprep.subr.bf16.mxu0 %v179_v3 }
  0x1c   :  { %147 = vmatpush3.bf16.msra.mxu0 %v45_v21 }
  0x1d   :  { %148 = vmatprep.subr.bf16.mxu0 %v179_v3 }
  0x20   :  { %149 = vmatpush3.bf16.msra.mxu0 %v44_v24 }
  0x23   :  { %151 = vmatmul.mubr.bf16.vlgmr.msra.gmra.mxu0 %v27_v26 }
  0xe3   :  { %v86_v27 = vpop.f32.mrf.mxu0 }
  0xe4   :  { %v105_v31 = vadd.f32 %v124_v28, %v86_v27 }
  0xe5   :  { %v152_v29 = vpop.f32.mrf.mxu0 }
  0xe6   :  { %v108_v33 = vmul.f32 %v107_v30, %v105_v31 }
  0xe7   :  { %v89_v32 = vpop.f32.mrf.mxu0 }
  0xe8   :  { %109 = vst [vmem:[#allocation3] sm:$0xff] %v108_v33 }
  0xe9   :  { %v153_v34 = vpop.f32.mrf.mxu0 }
  0xea   :  { %168 = shalt.err (!%p165_p4)
}
  0xeb   :  { %119 = dma.vmem_to_hbm [thread:$0]  %s117_s27, 128, %s271_s4, [#allocation4]  }
  0xec   :  { %177 = dma.done.wait [#allocation4], 128  }
  0xed   :  { %178 = vsyncadd [#allocation4], 4294967168 }
  0xee   :  { %123 = vsyncpa [#allocation4], 1 }

</bundles_post_ra>
